<compile_context>
chip_gen: v5e
topology: v5e:2x2
jax: 0.10.0
libtpu: 0.0.40
codegen_flags: <defaults>
</compile_context>

<pallas_src>
import jax
import jax.numpy as jnp
from jax.experimental import pallas as pl
from jax.experimental.pallas import tpu as pltpu

EPS = 1e-5
_LANE = 128


def _pad_to(n, m):
    return ((n + m - 1) // m) * m


def _pad2(a, rows, cols):
    return jnp.pad(a, ((0, rows - a.shape[0]), (0, cols - a.shape[1])))


def _vmem_capacity_bytes():
    """Physical per-core VMEM; conservative fallback = v7x's 64 MiB."""
    try:
        return int(pltpu.get_tpu_info().vmem_capacity_bytes)
    except Exception:
        return 64 << 20


def _bn_scale_shift(s, q, gamma, beta, inv_n):
    """Fused BN affine from per-feature sum / sum-of-squares (f32)."""
    mean = s * inv_n
    var = jnp.maximum(q * inv_n - mean * mean, 0.0)   # guard tiny negative var
    scale = gamma * jax.lax.rsqrt(var + EPS)
    shift = beta - mean * scale
    return scale, shift


# ----------------------------------------------------------------------------
# Kernel A: whole (padded) batch resident in VMEM, single un-gridded call.
# ----------------------------------------------------------------------------
def _make_resident_kernel(n_real, n_rows):
    inv_n = 1.0 / float(n_real)
    n_pad_rows = n_rows - n_real

    def kernel(x_ref, w1_ref, g1_ref, be1_ref, w2_ref, g2_ref, be2_ref,
               w3_ref, b3_ref, o_ref):
        cdt = x_ref.dtype
        h1p = jnp.dot(x_ref[...], w1_ref[...],
                      preferred_element_type=jnp.float32)
        s1 = jnp.sum(h1p, axis=0, keepdims=True)
        q1 = jnp.sum(h1p * h1p, axis=0, keepdims=True)
        sc1, sh1 = _bn_scale_shift(s1, q1, g1_ref[...], be1_ref[...], inv_n)
        h1 = jnp.maximum(h1p * sc1 + sh1, 0.0).astype(cdt)

        h2p = jnp.dot(h1, w2_ref[...], preferred_element_type=jnp.float32)
        s2 = jnp.sum(h2p, axis=0, keepdims=True)
        q2 = jnp.sum(h2p * h2p, axis=0, keepdims=True)
        if n_pad_rows:
            # Zero-padded batch rows exit layer 1 as relu(shift1) (b1/b2 are
            # folded away); remove their layer-2 contribution once instead of
            # masking every row before the matmul.
            row = jax.lax.broadcasted_iota(jnp.int32, (n_rows, 1), 0)
            pad = jnp.where(row >= n_real, h2p, 0.0)
            s2 = s2 - jnp.sum(pad, axis=0, keepdims=True)
            q2 = q2 - jnp.sum(pad * pad, axis=0, keepdims=True)
        sc2, sh2 = _bn_scale_shift(s2, q2, g2_ref[...], be2_ref[...], inv_n)
        h2 = jnp.maximum(h2p * sc2 + sh2, 0.0).astype(cdt)

        o_ref[...] = (jnp.dot(h2, w3_ref[...],
                              preferred_element_type=jnp.float32)
                      + b3_ref[...]).astype(o_ref.dtype)

    return kernel


# ----------------------------------------------------------------------------
# Tiled path: three small kernels.
# ----------------------------------------------------------------------------
def _make_stats1_kernel(inv_n):
    """Pass 1: accumulate layer-1 pre-activation stats; emit BN1 scale/shift."""
    def kernel(x_ref, w1_ref, g1_ref, be1_ref, sc1_ref, sh1_ref, s1, q1):
        t = pl.program_id(0)
        h1p = jnp.dot(x_ref[...], w1_ref[...],
                      preferred_element_type=jnp.float32)

        @pl.when(t == 0)
        def _():
            s1[...] = jnp.zeros_like(s1)
            q1[...] = jnp.zeros_like(q1)

        s1[...] += jnp.sum(h1p, axis=0, keepdims=True)
        q1[...] += jnp.sum(h1p * h1p, axis=0, keepdims=True)

        @pl.when(t == pl.num_programs(0) - 1)
        def _():
            sc, sh = _bn_scale_shift(s1[...], q1[...], g1_ref[...],
                                     be1_ref[...], inv_n)
            sc1_ref[...] = sc
            sh1_ref[...] = sh

    return kernel


def _make_stage_kernel(inv_n, tile_rows, n_pad_rows):
    """Pass 2: normalize layer 1, stage h1, accumulate layer-2 stats."""
    def kernel(x_ref, w1_ref, sc1_ref, sh1_ref, w2_ref, g2_ref, be2_ref,
               h1_ref, sc2_ref, sh2_ref, s2, q2):
        t = pl.program_id(0)
        h1p = jnp.dot(x_ref[...], w1_ref[...],
                      preferred_element_type=jnp.float32)
        h1 = jnp.maximum(h1p * sc1_ref[...] + sh1_ref[...], 0.0)
        h1 = h1.astype(h1_ref.dtype)
        h1_ref[...] = h1                       # staged for the output pass
        h2p = jnp.dot(h1, w2_ref[...], preferred_element_type=jnp.float32)

        @pl.when(t == 0)
        def _():
            s2[...] = jnp.zeros_like(s2)
            q2[...] = jnp.zeros_like(q2)

        s2[...] += jnp.sum(h2p, axis=0, keepdims=True)
        q2[...] += jnp.sum(h2p * h2p, axis=0, keepdims=True)

        @pl.when(t == pl.num_programs(0) - 1)
        def _():
            s2v = s2[...]
            q2v = q2[...]
            if n_pad_rows:
                # Padded rows live only in the last tile; correct once.
                row = jax.lax.broadcasted_iota(jnp.int32, (tile_rows, 1), 0)
                pad = jnp.where(row >= tile_rows - n_pad_rows, h2p, 0.0)
                s2v = s2v - jnp.sum(pad, axis=0, keepdims=True)
                q2v = q2v - jnp.sum(pad * pad, axis=0, keepdims=True)
            sc, sh = _bn_scale_shift(s2v, q2v, g2_ref[...], be2_ref[...],
                                     inv_n)
            sc2_ref[...] = sc
            sh2_ref[...] = sh

    return kernel


def _out_kernel(h1_ref, sc2_ref, sh2_ref, w2_ref, w3_ref, b3_ref, o_ref):
    """Pass 3: normalize layer 2 + layer 3 (embarrassingly parallel)."""
    h2p = jnp.dot(h1_ref[...], w2_ref[...], preferred_element_type=jnp.float32)
    h2 = jnp.maximum(h2p * sc2_ref[...] + sh2_ref[...], 0.0)
    h2 = h2.astype(w3_ref.dtype)
    o_ref[...] = (jnp.dot(h2, w3_ref[...], preferred_element_type=jnp.float32)
                  + b3_ref[...]).astype(o_ref.dtype)


# ----------------------------------------------------------------------------
# Wrapper
# ----------------------------------------------------------------------------
def batch_net_forward(x, params, *, tile_b=None, use_bf16=True):
    """Forward pass of Batch_Net (training-mode BatchNorm semantics).

    x: [B, in_dim] float32.
    params: (w1, b1, g1, be1, w2, b2, g2, be2, w3, b3); Linear weights stored
            pre-transposed as [in_features, out_features].
    tile_b: optional batch-tile size; forces the batch-tiled path.
    use_bf16: cast matmul operands to bf16 (f32 accumulation); False = exact f32.
    """
    (w1, b1, g1, be1, w2, b2, g2, be2, w3, b3) = params
    del b1, b2   # exactly cancelled by BatchNorm's mean subtraction -> no DMA

    f32 = jnp.float32
    cdt = jnp.bfloat16 if use_bf16 else f32       # matmul-operand dtype
    itm = jnp.dtype(cdt).itemsize
    granule = 16 if use_bf16 else 8               # sublane tiling of cdt

    B, in_dim = x.shape
    h1_dim, h2_dim, out_dim = w1.shape[1], w2.shape[1], w3.shape[1]
    IN_P, H1_P = _pad_to(in_dim, _LANE), _pad_to(h1_dim, _LANE)
    H2_P, OUT_P = _pad_to(h2_dim, _LANE), _pad_to(out_dim, _LANE)

    # Matmul operands in cdt (bf16 halves their HBM traffic and is MXU-native);
    # BN/bias parameters and every element-wise op stay f32.
    w1p = _pad2(w1.astype(cdt), IN_P, H1_P)
    w2p = _pad2(w2.astype(cdt), H1_P, H2_P)
    w3p = _pad2(w3.astype(cdt), H2_P, OUT_P)
    b3p = _pad2(b3.astype(f32), 1, OUT_P)
    g1p, be1p = _pad2(g1.astype(f32), 1, H1_P), _pad2(be1.astype(f32), 1, H1_P)
    g2p, be2p = _pad2(g2.astype(f32), 1, H2_P), _pad2(be2.astype(f32), 1, H2_P)

    inv_n = 1.0 / float(B)

    # Generation-aware VMEM budget (v5e/v6e: 128 MiB, v7x: 64 MiB per core).
    vmem_cap = _vmem_capacity_bytes()
    vmem_limit = int(min(vmem_cap * 3 // 4, 112 << 20))

    weight_bytes = (itm * (IN_P * H1_P + H1_P * H2_P + H2_P * OUT_P)
                    + 4 * (2 * H1_P + 2 * H2_P + OUT_P))

    # ---- Path A: whole (padded) batch resident in VMEM, single call.
    B_RES = _pad_to(B, granule)
    resident_bytes = (weight_bytes
                      + B_RES * (IN_P * itm + OUT_P * 4)
                      + 2 * B_RES * (H1_P + H2_P) * 4)   # live f32 intermediates
    if tile_b is None and 2 * resident_bytes <= vmem_limit:
        xp = _pad2(x.astype(cdt), B_RES, IN_P)
        out_p = pl.pallas_call(
            _make_resident_kernel(B, B_RES),
            out_shape=jax.ShapeDtypeStruct((B_RES, OUT_P), f32),
            compiler_params=pltpu.CompilerParams(vmem_limit_bytes=vmem_limit),
        )(xp, w1p, g1p, be1p, w2p, g2p, be2p, w3p, b3p)
        return out_p[:B, :out_dim]

    # ---- Path B: batch-tiled, three passes.
    if tile_b is None:
        tile_b = 1024 if vmem_cap >= (100 << 20) else 512   # v5e/v6e vs v7x
    TILE_B = _pad_to(min(tile_b, B), granule)
    # Keep the pipelined x / staged-h1 / out tiles well inside the VMEM budget.
    row_bytes = (IN_P + H1_P) * itm + OUT_P * 4
    while TILE_B > granule and 4 * TILE_B * row_bytes > vmem_limit // 2:
        TILE_B = _pad_to(max(granule, TILE_B // 2), granule)
    B_P = _pad_to(B, TILE_B)
    n_tiles = B_P // TILE_B
    n_pad_rows = B_P - B

    xp = _pad2(x.astype(cdt), B_P, IN_P)
    cparams_seq = pltpu.CompilerParams(
        dimension_semantics=("arbitrary",), vmem_limit_bytes=vmem_limit)

    def _const(shape):
        return pl.BlockSpec(shape, lambda t: (0, 0))

    # Pass 1: layer-1 batch statistics -> fused BN1 (scale, shift).
    sc1, sh1 = pl.pallas_call(
        _make_stats1_kernel(inv_n),
        out_shape=(jax.ShapeDtypeStruct((1, H1_P), f32),
                   jax.ShapeDtypeStruct((1, H1_P), f32)),
        grid=(n_tiles,),
        in_specs=[pl.BlockSpec((TILE_B, IN_P), lambda t: (t, 0)),
                  _const((IN_P, H1_P)), _const((1, H1_P)), _const((1, H1_P))],
        out_specs=(_const((1, H1_P)), _const((1, H1_P))),
        scratch_shapes=[pltpu.VMEM((1, H1_P), f32),
                        pltpu.VMEM((1, H1_P), f32)],
        compiler_params=cparams_seq,
    )(xp, w1p, g1p, be1p)

    # Pass 2: normalize layer 1, stage h1 to HBM, layer-2 statistics.
    h1s, sc2, sh2 = pl.pallas_call(
        _make_stage_kernel(inv_n, TILE_B, n_pad_rows),
        out_shape=(jax.ShapeDtypeStruct((B_P, H1_P), cdt),
                   jax.ShapeDtypeStruct((1, H2_P), f32),
                   jax.ShapeDtypeStruct((1, H2_P), f32)),
        grid=(n_tiles,),
        in_specs=[pl.BlockSpec((TILE_B, IN_P), lambda t: (t, 0)),
                  _const((IN_P, H1_P)), _const((1, H1_P)), _const((1, H1_P)),
                  _const((H1_P, H2_P)), _const((1, H2_P)), _const((1, H2_P))],
        out_specs=(pl.BlockSpec((TILE_B, H1_P), lambda t: (t, 0)),
                   _const((1, H2_P)), _const((1, H2_P))),
        scratch_shapes=[pltpu.VMEM((1, H2_P), f32),
                        pltpu.VMEM((1, H2_P), f32)],
        compiler_params=cparams_seq,
    )(xp, w1p, sc1, sh1, w2p, g2p, be2p)

    # Pass 3: normalize layer 2 + layer 3; "parallel" batch-tile axis lets v7x
    # split it across both TensorCores.
    out_p = pl.pallas_call(
        _out_kernel,
        out_shape=jax.ShapeDtypeStruct((B_P, OUT_P), f32),
        grid=(n_tiles,),
        in_specs=[pl.BlockSpec((TILE_B, H1_P), lambda t: (t, 0)),
                  _const((1, H2_P)), _const((1, H2_P)),
                  _const((H1_P, H2_P)), _const((H2_P, OUT_P)),
                  _const((1, OUT_P))],
        out_specs=pl.BlockSpec((TILE_B, OUT_P), lambda t: (t, 0)),
        compiler_params=pltpu.CompilerParams(
            dimension_semantics=("parallel",), vmem_limit_bytes=vmem_limit),
    )(h1s, sc2, sh2, w2p, w3p, b3p)
    return out_p[:B, :out_dim]


# ----------------------------------------------------------------------------
# Parameters & pure-JAX reference
# ----------------------------------------------------------------------------
def init_params(key, in_dim, n_hidden_1, n_hidden_2, out_dim):
    """Deterministic synthetic parameters matching Batch_Net's shapes.

    Linear weights are stored already transposed: [in_features, out_features].
    BatchNorm gamma/beta stored as [1, features].
    """
    ks = jax.random.split(key, 8)
    s1 = 1.0 / jnp.sqrt(in_dim)
    s2 = 1.0 / jnp.sqrt(n_hidden_1)
    s3 = 1.0 / jnp.sqrt(n_hidden_2)
    w1 = jax.random.uniform(ks[0], (in_dim, n_hidden_1), jnp.float32, -s1, s1)
    b1 = jax.random.uniform(ks[1], (1, n_hidden_1), jnp.float32, -s1, s1)
    w2 = jax.random.uniform(ks[2], (n_hidden_1, n_hidden_2), jnp.float32, -s2, s2)
    b2 = jax.random.uniform(ks[3], (1, n_hidden_2), jnp.float32, -s2, s2)
    w3 = jax.random.uniform(ks[4], (n_hidden_2, out_dim), jnp.float32, -s3, s3)
    b3 = jax.random.uniform(ks[5], (1, out_dim), jnp.float32, -s3, s3)
    g1 = jnp.ones((1, n_hidden_1), jnp.float32) + 0.01 * jax.random.normal(ks[6], (1, n_hidden_1))
    be1 = jnp.zeros((1, n_hidden_1), jnp.float32)
    g2 = jnp.ones((1, n_hidden_2), jnp.float32) + 0.01 * jax.random.normal(ks[7], (1, n_hidden_2))
    be2 = jnp.zeros((1, n_hidden_2), jnp.float32)
    return (w1, b1, g1, be1, w2, b2, g2, be2, w3, b3)


def reference_forward(x, params):
    """Pure-JAX reference with PyTorch semantics (biases included, two-pass var)."""
    (w1, b1, g1, be1, w2, b2, g2, be2, w3, b3) = params

    def bn_relu(h, g, be):
        mean = jnp.mean(h, axis=0, keepdims=True)
        var = jnp.mean((h - mean) ** 2, axis=0, keepdims=True)
        return jnp.maximum((h - mean) / jnp.sqrt(var + EPS) * g + be, 0.0)

    h1 = bn_relu(x @ w1 + b1, g1, be1)
    h2 = bn_relu(h1 @ w2 + b2, g2, be2)
    return h2 @ w3 + b3


if __name__ == "__main__":
    in_dim, n_h1, n_h2, out_dim = 64, 32, 32, 10
    key = jax.random.PRNGKey(0)
    kx1, kx2, kp = jax.random.split(key, 3)
    params = init_params(kp, in_dim, n_h1, n_h2, out_dim)

    # 1) Exact-f32 numerics, whole-batch-resident kernel.
    x1 = jax.random.normal(kx1, (8, in_dim), jnp.float32)
    out1 = jax.block_until_ready(batch_net_forward(x1, params, use_bf16=False))
    ref1 = reference_forward(x1, params)
    assert out1.shape == (8, out_dim)
    assert jnp.allclose(out1, ref1, atol=1e-4, rtol=1e-4), "resident f32 mismatch"

    # 2) Exact-f32 numerics, forced batch-tiled 3-pass path (uneven batch
    #    exercises batch padding + the padded-row statistics correction).
    x2 = jax.random.normal(kx2, (13, in_dim), jnp.float32)
    out2 = jax.block_until_ready(
        batch_net_forward(x2, params, tile_b=8, use_bf16=False))
    ref2 = reference_forward(x2, params)
    assert out2.shape == (13, out_dim)
    assert jnp.allclose(out2, ref2, atol=1e-4, rtol=1e-4), "tiled f32 mismatch"

    # 3) Default bf16-operand path (resident and tiled); tolerance loosened for
    #    bf16 operand rounding (accumulation stays f32).
    out3 = jax.block_until_ready(batch_net_forward(x2, params))
    out4 = jax.block_until_ready(batch_net_forward(x2, params, tile_b=8))
    assert jnp.allclose(out3, ref2, atol=5e-2, rtol=5e-2), "resident bf16 mismatch"
    assert jnp.allclose(out4, ref2, atol=5e-2, rtol=5e-2), "tiled bf16 mismatch"

    print("KERNEL_OK")
</pallas_src>

<mosaic_0001>
module attributes {stable_mosaic.version = 11 : i64} {
  func.func @kernel(%arg0: memref<8x128xf32, #tpu.memory_space<vmem>>, %arg1: memref<128x128xf32, #tpu.memory_space<vmem>>, %arg2: memref<1x128xf32, #tpu.memory_space<vmem>>, %arg3: memref<1x128xf32, #tpu.memory_space<vmem>>, %arg4: memref<128x128xf32, #tpu.memory_space<vmem>>, %arg5: memref<1x128xf32, #tpu.memory_space<vmem>>, %arg6: memref<1x128xf32, #tpu.memory_space<vmem>>, %arg7: memref<128x128xf32, #tpu.memory_space<vmem>>, %arg8: memref<1x128xf32, #tpu.memory_space<vmem>>, %arg9: memref<8x128xf32, #tpu.memory_space<vmem>>) attributes {dimension_semantics = [], scalar_prefetch = 0 : i64, scratch_operands = 0 : i64, tpu.core_type = #tpu.core_type<tc>} {
    %c0 = arith.constant 0 : index
    %c0_0 = arith.constant 0 : index
    %0 = vector.load %arg0[%c0, %c0_0] : memref<8x128xf32, #tpu.memory_space<vmem>>, vector<8x128xf32>
    %c0_1 = arith.constant 0 : index
    %c0_2 = arith.constant 0 : index
    %1 = vector.load %arg1[%c0_1, %c0_2] : memref<128x128xf32, #tpu.memory_space<vmem>>, vector<128x128xf32>
    %cst = arith.constant dense<0.000000e+00> : vector<8x128xf32>
    %2 = tpu.matmul %0, %1, %cst {dimension_numbers = #tpu.dot_dimension_numbers<[1], [0], [0], [1], [0, 0, 1, 1], [], []>} : vector<8x128xf32>, vector<128x128xf32>, vector<8x128xf32> -> vector<8x128xf32>
    %cst_3 = arith.constant dense<0.000000e+00> : vector<128xf32>
    %3 = vector.multi_reduction <add>, %2, %cst_3 [0] : vector<8x128xf32> to vector<128xf32>
    %4 = vector.shape_cast %3 : vector<128xf32> to vector<1x128xf32>
    %5 = arith.mulf %2, %2 : vector<8x128xf32>
    %cst_4 = arith.constant dense<0.000000e+00> : vector<128xf32>
    %6 = vector.multi_reduction <add>, %5, %cst_4 [0] : vector<8x128xf32> to vector<128xf32>
    %7 = vector.shape_cast %6 : vector<128xf32> to vector<1x128xf32>
    %c0_5 = arith.constant 0 : index
    %c0_6 = arith.constant 0 : index
    %8 = vector.load %arg2[%c0_5, %c0_6] : memref<1x128xf32, #tpu.memory_space<vmem>>, vector<1x128xf32>
    %c0_7 = arith.constant 0 : index
    %c0_8 = arith.constant 0 : index
    %9 = vector.load %arg3[%c0_7, %c0_8] : memref<1x128xf32, #tpu.memory_space<vmem>>, vector<1x128xf32>
    %cst_9 = arith.constant 1.250000e-01 : f32
    %10 = vector.broadcast %cst_9 : f32 to vector<1x128xf32>
    %11 = arith.mulf %4, %10 : vector<1x128xf32>
    %cst_10 = arith.constant 1.250000e-01 : f32
    %12 = vector.broadcast %cst_10 : f32 to vector<1x128xf32>
    %13 = arith.mulf %7, %12 : vector<1x128xf32>
    %14 = arith.mulf %11, %11 : vector<1x128xf32>
    %15 = arith.subf %13, %14 : vector<1x128xf32>
    %cst_11 = arith.constant 0.000000e+00 : f32
    %16 = vector.broadcast %cst_11 : f32 to vector<1x128xf32>
    %17 = arith.maximumf %15, %16 : vector<1x128xf32>
    %cst_12 = arith.constant 9.99999974E-6 : f32
    %18 = vector.broadcast %cst_12 : f32 to vector<1x128xf32>
    %19 = arith.addf %17, %18 : vector<1x128xf32>
    %20 = math.rsqrt %19 : vector<1x128xf32>
    %21 = arith.mulf %8, %20 : vector<1x128xf32>
    %22 = arith.mulf %11, %21 : vector<1x128xf32>
    %23 = arith.subf %9, %22 : vector<1x128xf32>
    %24 = vector.broadcast %21 : vector<1x128xf32> to vector<8x128xf32>
    %25 = arith.mulf %2, %24 : vector<8x128xf32>
    %26 = vector.broadcast %23 : vector<1x128xf32> to vector<8x128xf32>
    %27 = arith.addf %25, %26 : vector<8x128xf32>
    %cst_13 = arith.constant 0.000000e+00 : f32
    %28 = vector.broadcast %cst_13 : f32 to vector<8x128xf32>
    %29 = arith.maximumf %27, %28 : vector<8x128xf32>
    %c0_14 = arith.constant 0 : index
    %c0_15 = arith.constant 0 : index
    %30 = vector.load %arg4[%c0_14, %c0_15] : memref<128x128xf32, #tpu.memory_space<vmem>>, vector<128x128xf32>
    %cst_16 = arith.constant dense<0.000000e+00> : vector<8x128xf32>
    %31 = tpu.matmul %29, %30, %cst_16 {dimension_numbers = #tpu.dot_dimension_numbers<[1], [0], [0], [1], [0, 0, 1, 1], [], []>} : vector<8x128xf32>, vector<128x128xf32>, vector<8x128xf32> -> vector<8x128xf32>
    %cst_17 = arith.constant dense<0.000000e+00> : vector<128xf32>
    %32 = vector.multi_reduction <add>, %31, %cst_17 [0] : vector<8x128xf32> to vector<128xf32>
    %33 = vector.shape_cast %32 : vector<128xf32> to vector<1x128xf32>
    %34 = arith.mulf %31, %31 : vector<8x128xf32>
    %cst_18 = arith.constant dense<0.000000e+00> : vector<128xf32>
    %35 = vector.multi_reduction <add>, %34, %cst_18 [0] : vector<8x128xf32> to vector<128xf32>
    %36 = vector.shape_cast %35 : vector<128xf32> to vector<1x128xf32>
    %c0_19 = arith.constant 0 : index
    %c0_20 = arith.constant 0 : index
    %37 = vector.load %arg5[%c0_19, %c0_20] : memref<1x128xf32, #tpu.memory_space<vmem>>, vector<1x128xf32>
    %c0_21 = arith.constant 0 : index
    %c0_22 = arith.constant 0 : index
    %38 = vector.load %arg6[%c0_21, %c0_22] : memref<1x128xf32, #tpu.memory_space<vmem>>, vector<1x128xf32>
    %cst_23 = arith.constant 1.250000e-01 : f32
    %39 = vector.broadcast %cst_23 : f32 to vector<1x128xf32>
    %40 = arith.mulf %33, %39 : vector<1x128xf32>
    %cst_24 = arith.constant 1.250000e-01 : f32
    %41 = vector.broadcast %cst_24 : f32 to vector<1x128xf32>
    %42 = arith.mulf %36, %41 : vector<1x128xf32>
    %43 = arith.mulf %40, %40 : vector<1x128xf32>
    %44 = arith.subf %42, %43 : vector<1x128xf32>
    %cst_25 = arith.constant 0.000000e+00 : f32
    %45 = vector.broadcast %cst_25 : f32 to vector<1x128xf32>
    %46 = arith.maximumf %44, %45 : vector<1x128xf32>
    %cst_26 = arith.constant 9.99999974E-6 : f32
    %47 = vector.broadcast %cst_26 : f32 to vector<1x128xf32>
    %48 = arith.addf %46, %47 : vector<1x128xf32>
    %49 = math.rsqrt %48 : vector<1x128xf32>
    %50 = arith.mulf %37, %49 : vector<1x128xf32>
    %51 = arith.mulf %40, %50 : vector<1x128xf32>
    %52 = arith.subf %38, %51 : vector<1x128xf32>
    %53 = vector.broadcast %50 : vector<1x128xf32> to vector<8x128xf32>
    %54 = arith.mulf %31, %53 : vector<8x128xf32>
    %55 = vector.broadcast %52 : vector<1x128xf32> to vector<8x128xf32>
    %56 = arith.addf %54, %55 : vector<8x128xf32>
    %cst_27 = arith.constant 0.000000e+00 : f32
    %57 = vector.broadcast %cst_27 : f32 to vector<8x128xf32>
    %58 = arith.maximumf %56, %57 : vector<8x128xf32>
    %c0_28 = arith.constant 0 : index
    %c0_29 = arith.constant 0 : index
    %59 = vector.load %arg7[%c0_28, %c0_29] : memref<128x128xf32, #tpu.memory_space<vmem>>, vector<128x128xf32>
    %cst_30 = arith.constant dense<0.000000e+00> : vector<8x128xf32>
    %60 = tpu.matmul %58, %59, %cst_30 {dimension_numbers = #tpu.dot_dimension_numbers<[1], [0], [0], [1], [0, 0, 1, 1], [], []>} : vector<8x128xf32>, vector<128x128xf32>, vector<8x128xf32> -> vector<8x128xf32>
    %c0_31 = arith.constant 0 : index
    %c0_32 = arith.constant 0 : index
    %61 = vector.load %arg8[%c0_31, %c0_32] : memref<1x128xf32, #tpu.memory_space<vmem>>, vector<1x128xf32>
    %62 = vector.broadcast %61 : vector<1x128xf32> to vector<8x128xf32>
    %63 = arith.addf %60, %62 : vector<8x128xf32>
    %c0_33 = arith.constant 0 : index
    %c0_34 = arith.constant 0 : index
    %64 = vector.load %arg9[%c0_33, %c0_34] : memref<8x128xf32, #tpu.memory_space<vmem>>, vector<8x128xf32>
    tpu.vector_store %arg9[%c0_33, %c0_34], %63 {strides = array<i32>} : memref<8x128xf32, #tpu.memory_space<vmem>>, vector<8x128xf32>,
    return
  }
}

</mosaic_0001>

<bundles_post_ra>
// kernel: tpu_custom_call.1
= control target key start
LH: loop header
LB: loop body
LE: loop exit
PB: predicated region body
PF: predicated region fallthrough
CT: control target
= control target key end

     0   :  { %14 = vsyncpa [#allocation3], 0  ;;  %s540_s0 = inlined_call_operand.hbm [shape: f32[8,128], index: 0, kind: input, shape index: {}]   ;;  %s541_s1 = inlined_call_operand.hbm [shape: f32[128,128], index: 1, kind: input, shape index: {}]   ;;  %s542_s2 = inlined_call_operand.vmem [shape: f32[1,128], index: 2, kind: input, shape index: {}]   ;;  %s543_s3 = inlined_call_operand.vmem [shape: f32[1,128], index: 3, kind: input, shape index: {}]   ;;  %s544_s4 = inlined_call_operand.hbm [shape: f32[128,128], index: 4, kind: input, shape index: {}]   ;;  %s545_s5 = inlined_call_operand.vmem [shape: f32[1,128], index: 5, kind: input, shape index: {}]   ;;  %s546_s6 = inlined_call_operand.vmem [shape: f32[1,128], index: 6, kind: input, shape index: {}]   ;;  %s547_s7 = inlined_call_operand.hbm [shape: f32[128,128], index: 7, kind: input, shape index: {}]   ;;  %s548_s8 = inlined_call_operand.vmem [shape: f32[1,128], index: 8, kind: input, shape index: {}]   ;;  %s549_s9 = inlined_call_operand.hbm [shape: f32[8,128], index: 9, kind: output, shape index: {}]  }
   0x1   :  { %15 = vsyncpa [#allocation6], 0 }
   0x2   :  { %16 = vsyncpa [#allocation9], 0  ;;  %s33_s11 = sshll.u32 %s541_s1, 4  ;;  %s34_s11 = int_to_ptr.hbm [resolvable:$true] %s33_s11 }
   0x3   :  { %17 = vsyncpa [#allocation4], 0  ;;  %s453_s12 = smov [#allocation5]   ;;  %s23_s16 = sshll.u32 %s540_s0, 4  ;;  %s24_s16 = int_to_ptr.hbm [resolvable:$true] %s23_s16 }
   0x4   :  { %s35_s13 = sshll.u32 %s453_s12, 4  ;;  %s454_s17 = smov 128   ;;  %s36_s13 = int_to_ptr.vmem [resolvable:$true] %s35_s13 }
   0x5   :  { %s455_s18 = smov 8   ;;  %s456_s19 = smov [#allocation2]  }
   0x6   :  { %41 = dma.hbm_to_vmem [thread:$0]  %s34_s11, 2048, %s36_s13, [#allocation6], %s454_s17, %s454_s17, %s455_s18  }
   0x7   :  { %s25_s20 = sshll.u32 %s456_s19, 4  ;;  %s50_s23 = sshll.u32 %s544_s4, 4  ;;  %s26_s20 = int_to_ptr.vmem [resolvable:$true] %s25_s20  ;;  %s51_s23 = int_to_ptr.hbm [resolvable:$true] %s50_s23 }
   0x8   :  { %28 = dma.hbm_to_vmem [thread:$0]  %s24_s16, 128, %s26_s20, [#allocation3]  }
   0x9   :  { %s67_s25 = sshll.u32 %s547_s7, 4  ;;  %s457_s26 = smov [#allocation7]   ;;  %s68_s25 = int_to_ptr.hbm [resolvable:$true] %s67_s25 }
   0xa   :  { %s52_s27 = sshll.u32 %s457_s26, 4  ;;  %s458_s0 = smov [#allocation8]   ;;  %s53_s27 = int_to_ptr.vmem [resolvable:$true] %s52_s27 }
   0xb   :  { %58 = dma.hbm_to_vmem [thread:$0]  %s51_s23, 2048, %s53_s27, [#allocation6], %s454_s17, %s454_s17, %s455_s18  }
   0xc   :  { %s69_s28 = sshll.u32 %s458_s0, 4  ;;  %s70_s28 = int_to_ptr.vmem [resolvable:$true] %s69_s28 }
   0xd   :  { %75 = dma.hbm_to_vmem [thread:$0]  %s68_s25, 2048, %s70_s28, [#allocation9], %s454_s17, %s454_s17, %s455_s18  }
   0xe   :  { %445 = dma.done.wait [#allocation3], 128  }
   0xf   :  { %446 = vsyncadd [#allocation3], 4294967168 }
  0x10   :  { %447 = dma.done.wait [#allocation6], 4096  }
  0x11   :  { %448 = vsyncadd [#allocation6], 4294963200 }
  0x12   :  { %449 = dma.done.wait [#allocation9], 2048  }
  0x13   :  { %450 = vsyncadd [#allocation9], 4294965248  ;;  %v110_v0 = vld [vmem:[#allocation5 + $0x78] sm:$0xff]  ;;  %v109_v1 = vld [vmem:[#allocation5 + $0x70] sm:$0xff]  ;;  %s301_s17 = sshll.u32 %s549_s9, 4  ;;  %s302_s17 = int_to_ptr.hbm [resolvable:$true] %s301_s17 }
  0x14   :  { %111 = vmatpush.msra.mxu0 %v110_v0  ;;  %v108_v2 = vld [vmem:[#allocation5 + $0x68] sm:$0xff]  ;;  %v107_v3 = vld [vmem:[#allocation5 + $0x60] sm:$0xff]  ;;  %v106_v4 = vld [vmem:[#allocation5 + $0x58] sm:$0xff] }
  0x15   :  { %v105_v5 = vld [vmem:[#allocation5 + $0x50] sm:$0xff]  ;;  %v104_v6 = vld [vmem:[#allocation5 + $0x48] sm:$0xff]  ;;  %v103_v7 = vld [vmem:[#allocation5 + $0x40] sm:$0xff] }
  0x16   :  { %112 = vmatpush.msra.mxu0 %v109_v1  ;;  %v102_v8 = vld [vmem:[#allocation5 + $0x38] sm:$0xff]  ;;  %v101_v9 = vld [vmem:[#allocation5 + $0x30] sm:$0xff]  ;;  %v100_v10 = vld [vmem:[#allocation5 + $0x28] sm:$0xff] }
  0x17   :  { %v99_v11 = vld [vmem:[#allocation5 + $0x20] sm:$0xff]  ;;  %v98_v12 = vld [vmem:[#allocation5 + $0x18] sm:$0xff]  ;;  %v97_v13 = vld [vmem:[#allocation5 + $0x10] sm:$0xff] }
  0x18   :  { %113 = vmatpush.msra.mxu0 %v108_v2  ;;  %v96_v14 = vld [vmem:[#allocation5 + $0x8] sm:$0xff]  ;;  %v95_v15 = vld [vmem:[#allocation5] sm:$0xff]  ;;  %v94_v16 = vld [vmem:[#allocation2] sm:$0xff] }
  0x19   :  { %v189_v17 = vld [vmem:[#allocation7 + $0x78] sm:$0xff]  ;;  %v188_v18 = vld [vmem:[#allocation7 + $0x70] sm:$0xff]  ;;  %v187_v19 = vld [vmem:[#allocation7 + $0x68] sm:$0xff] }
  0x1a   :  { %114 = vmatpush.msra.mxu0 %v107_v3  ;;  %190 = vmatpush.msra.mxu1 %v189_v17  ;;  %v186_v20 = vld [vmem:[#allocation7 + $0x60] sm:$0xff]  ;;  %v185_v21 = vld [vmem:[#allocation7 + $0x58] sm:$0xff]  ;;  %v184_v22 = vld [vmem:[#allocation7 + $0x50] sm:$0xff] }
  0x1b   :  { %v183_v26 = vld [vmem:[#allocation7 + $0x48] sm:$0xff]  ;;  %v182_v29 = vld [vmem:[#allocation7 + $0x40] sm:$0xff]  ;;  %v181_v32 = vld [vmem:[#allocation7 + $0x38] sm:$0xff] }
  0x1c   :  { %115 = vmatpush.msra.mxu0 %v106_v4  ;;  %191 = vmatpush.msra.mxu1 %v188_v18  ;;  %v180_v35 = vld [vmem:[#allocation7 + $0x30] sm:$0xff]  ;;  %v179_v38 = vld [vmem:[#allocation7 + $0x28] sm:$0xff]  ;;  %v178_v41 = vld [vmem:[#allocation7 + $0x20] sm:$0xff] }
  0x1d   :  { %v177_v44 = vld [vmem:[#allocation7 + $0x18] sm:$0xff]  ;;  %v176_v45 = vld [vmem:[#allocation7 + $0x10] sm:$0xff]  ;;  %v175_v48 = vld [vmem:[#allocation7 + $0x8] sm:$0xff] }
  0x1e   :  { %116 = vmatpush.msra.mxu0 %v105_v5  ;;  %192 = vmatpush.msra.mxu1 %v187_v19  ;;  %v174_v50 = vld [vmem:[#allocation7] sm:$0xff]  ;;  %v144_v58 = vld [vmem:[%s542_s2] sm:$0x1] }
  0x1f   :  { %v145_v62 = vld [vmem:[%s543_s3] sm:$0x1]  ;;  %v261_v18 = vld [vmem:[#allocation8 + $0x40] sm:$0xff] }
  0x20   :  { %117 = vmatpush.msra.mxu0 %v104_v6  ;;  %193 = vmatpush.msra.mxu1 %v186_v20  ;;  %v268_v6 = vld [vmem:[#allocation8 + $0x78] sm:$0xff] }
  0x21   :  { %273 = vmatpush.msra.mxu2 %v268_v6 }
  0x22   :  { %118 = vmatpush.msra.mxu0 %v103_v7  ;;  %194 = vmatpush.msra.mxu1 %v185_v21  ;;  %v267_v7 = vld [vmem:[#allocation8 + $0x70] sm:$0xff]  ;;  %v260_v21 = vld [vmem:[#allocation8 + $0x38] sm:$0xff] }
  0x23   :  { %274 = vmatpush.msra.mxu2 %v267_v7 }
  0x24   :  { %119 = vmatpush.msra.mxu0 %v102_v8  ;;  %195 = vmatpush.msra.mxu1 %v184_v22  ;;  %v266_v8 = vld [vmem:[#allocation8 + $0x68] sm:$0xff] }
  0x25   :  { %275 = vmatpush.msra.mxu2 %v266_v8 }
  0x26   :  { %120 = vmatpush.msra.mxu0 %v101_v9  ;;  %196 = vmatpush.msra.mxu1 %v183_v26  ;;  %v265_v9 = vld [vmem:[#allocation8 + $0x60] sm:$0xff] }
  0x27   :  { %276 = vmatpush.msra.mxu2 %v265_v9 }
  0x28   :  { %121 = vmatpush.msra.mxu0 %v100_v10  ;;  %197 = vmatpush.msra.mxu1 %v182_v29  ;;  %v264_v10 = vld [vmem:[#allocation8 + $0x58] sm:$0xff] }
  0x29   :  { %277 = vmatpush.msra.mxu2 %v264_v10 }
  0x2a   :  { %122 = vmatpush.msra.mxu0 %v99_v11  ;;  %198 = vmatpush.msra.mxu1 %v181_v32  ;;  %v263_v11 = vld [vmem:[#allocation8 + $0x50] sm:$0xff] }
  0x2b   :  { %278 = vmatpush.msra.mxu2 %v263_v11 }
  0x2c   :  { %123 = vmatpush.msra.mxu0 %v98_v12  ;;  %199 = vmatpush.msra.mxu1 %v180_v35 }
  0x2e   :  { %124 = vmatpush.msra.mxu0 %v97_v13  ;;  %200 = vmatpush.msra.mxu1 %v179_v38 }
  0x30   :  { %125 = vmatpush.msra.mxu0 %v96_v14  ;;  %201 = vmatpush.msra.mxu1 %v178_v41 }
  0x32   :  { %126 = vmatpush.msra.mxu0 %v95_v15  ;;  %202 = vmatpush.msra.mxu1 %v177_v44  ;;  %v262_v15 = vld [vmem:[#allocation8 + $0x48] sm:$0xff] }
  0x33   :  { %127 = vmatmul.f32.vlgmr.msra.gmra.mxu0 %v94_v16  ;;  %279 = vmatpush.msra.mxu2 %v262_v15 }
  0x34   :  { %203 = vmatpush.msra.mxu1 %v176_v45 }
  0x35   :  { %280 = vmatpush.msra.mxu2 %v261_v18 }
  0x36   :  { %204 = vmatpush.msra.mxu1 %v175_v48 }
  0x37   :  { %281 = vmatpush.msra.mxu2 %v260_v21 }
  0x38   :  { %205 = vmatpush.msra.mxu1 %v174_v50 }
  0xb0   :  { %v128_v23 = vpop.f32.mrf.mxu0 }
  0xb1   :  { %v131_v24 = vrot.slane %v128_v23, 4  ;;  %v137_v25 = vmul.f32 %v128_v23, %v128_v23 }
  0xb3   :  { %v132_v27 = vadd.f32 %v131_v24, %v128_v23  ;;  %v138_v28 = vrot.slane %v137_v25, 4  ;;  %v259_v24 = vld [vmem:[#allocation8 + $0x30] sm:$0xff] }
  0xb4   :  { %282 = vmatpush.msra.mxu2 %v259_v24 }
  0xb5   :  { %v133_v30 = vrot.slane %v132_v27, 2  ;;  %v139_v31 = vadd.f32 %v138_v28, %v137_v25 }
  0xb7   :  { %v134_v33 = vadd.f32 %v133_v30, %v132_v27  ;;  %v140_v34 = vrot.slane %v139_v31, 2  ;;  %v258_v27 = vld [vmem:[#allocation8 + $0x28] sm:$0xff]  ;;  %v257_v30 = vld [vmem:[#allocation8 + $0x20] sm:$0xff] }
  0xb8   :  { %283 = vmatpush.msra.mxu2 %v258_v27 }
  0xb9   :  { %v135_v36 = vrot.slane %v134_v33, 1  ;;  %v141_v37 = vadd.f32 %v140_v34, %v139_v31  ;;  %v255_v34 = vld [vmem:[#allocation8 + $0x10] sm:$0xff] }
  0xba   :  { %284 = vmatpush.msra.mxu2 %v257_v30 }
  0xbb   :  { %v136_v39 = vadd.f32 %v135_v36, %v134_v33  ;;  %v142_v40 = vrot.slane %v141_v37, 1  ;;  %v256_v33 = vld [vmem:[#allocation8 + $0x18] sm:$0xff] }
  0xbc   :  { %285 = vmatpush.msra.mxu2 %v256_v33 }
  0xbd   :  { %v143_v42 = vadd.f32 %v142_v40, %v141_v37  ;;  %v146_v43 = vmul.f32 0.125, %v136_v39  ;;  %v254_v37 = vld [vmem:[#allocation8 + $0x8] sm:$0xff]  ;;  %v253_v39 = vld [vmem:[#allocation8] sm:$0xff] }
  0xbe   :  { %286 = vmatpush.msra.mxu2 %v255_v34 }
  0xbf   :  { %v147_v46 = vmul.f32 0.125, %v143_v42  ;;  %v148_v47 = vmul.f32 %v146_v43, %v146_v43 }
  0xc0   :  { %287 = vmatpush.msra.mxu2 %v254_v37 }
  0xc1   :  { %v149_v49 = vsub.f32 %v147_v46, %v148_v47  ;;  %v223_v47 = vld [vmem:[%s545_s5] sm:$0x1]  ;;  %s459_s5 = smov [#allocation10]  }
  0xc2   :  { %288 = vmatpush.msra.mxu2 %v253_v39  ;;  %s299_s14 = sshll.u32 %s459_s5, 4  ;;  %s300_s14 = int_to_ptr.vmem [resolvable:$true] %s299_s14 }
  0xc3   :  { %v150_v51 = vmax.f32 %v149_v49, 0.0 }
  0xc5   :  { %v151_v52 = vadd.f32 1e-05, %v150_v51  ;;  %v224_v51 = vld [vmem:[%s546_s6] sm:$0x1] }
  0xc7   :  { %321 = vrsqrt.f32 %v151_v52  ;;  %vm158_vm1 = vweird.f32 %v151_v52 }
  0xcd   :  { %v322_v53 = vpop.eup %321 }
  0xce   :  { %v153_v54 = vmul.f32 %v322_v53, %v151_v52  ;;  %vm159_vm0 = vweird.f32 %v322_v53 }
  0xcf   :  { %vm160_vm2 = vmor %vm158_vm1, %vm159_vm0 }
  0xd0   :  { %v154_v55 = vmul.f32 %v322_v53, %v153_v54 }
  0xd2   :  { %v155_v56 = vmul.f32 0.5, %v154_v55 }
  0xd4   :  { %v156_v57 = vsub.f32 1.5, %v155_v56 }
  0xd6   :  { %v157_v59 = vmul.f32 %v322_v53, %v156_v57 }
  0xd8   :  { %v161_v60 = vsel %vm160_vm2, %v322_v53, %v157_v59  ;;  %v320_v59 = vld [vmem:[%s548_s8] ss:$0 sm:$0xff] }
  0xd9   :  { %v162_v61 = vmul.f32 %v161_v60, %v144_v58 }
  0xdb   :  { %v166_v63 = vperm.slane %v162_v61, 0  ;;  %v163_v0 = vmul.f32 %v162_v61, %v146_v43 }
  0xdd   :  { %v164_v1 = vsub.f32 %v145_v62, %v163_v0  ;;  %v168_v2 = vmul.f32 %v166_v63, %v128_v23 }
  0xdf   :  { %v170_v3 = vperm.slane %v164_v1, 0 }
  0xe1   :  { %v172_v4 = vadd.f32 %v170_v3, %v168_v2 }
  0xe3   :  { %v173_v5 = vmax.f32 %v172_v4, 0.0 }
  0xe5   :  { %206 = vmatmul.f32.vlgmr.msra.gmra.mxu1 %v173_v5 }
 0x162   :  { %v207_v12 = vpop.f32.mrf.mxu1 }
 0x163   :  { %v210_v13 = vrot.slane %v207_v12, 4  ;;  %v216_v14 = vmul.f32 %v207_v12, %v207_v12 }
 0x165   :  { %v211_v16 = vadd.f32 %v210_v13, %v207_v12  ;;  %v217_v17 = vrot.slane %v216_v14, 4 }
 0x167   :  { %v212_v19 = vrot.slane %v211_v16, 2  ;;  %v218_v20 = vadd.f32 %v217_v17, %v216_v14 }
 0x169   :  { %v213_v22 = vadd.f32 %v212_v19, %v211_v16  ;;  %v219_v23 = vrot.slane %v218_v20, 2 }
 0x16b   :  { %v214_v25 = vrot.slane %v213_v22, 1  ;;  %v220_v26 = vadd.f32 %v219_v23, %v218_v20 }
 0x16d   :  { %v215_v28 = vadd.f32 %v214_v25, %v213_v22  ;;  %v221_v29 = vrot.slane %v220_v26, 1 }
 0x16f   :  { %v222_v31 = vadd.f32 %v221_v29, %v220_v26  ;;  %v225_v32 = vmul.f32 0.125, %v215_v28 }
 0x171   :  { %v226_v35 = vmul.f32 0.125, %v222_v31  ;;  %v227_v36 = vmul.f32 %v225_v32, %v225_v32 }
 0x173   :  { %v228_v38 = vsub.f32 %v226_v35, %v227_v36 }
 0x175   :  { %v229_v40 = vmax.f32 %v228_v38, 0.0 }
 0x177   :  { %v230_v41 = vadd.f32 1e-05, %v229_v40 }
 0x179   :  { %323 = vrsqrt.f32 %v230_v41  ;;  %vm237_vm4 = vweird.f32 %v230_v41 }
 0x17f   :  { %v324_v42 = vpop.eup %323 }
 0x180   :  { %v232_v43 = vmul.f32 %v324_v42, %v230_v41  ;;  %vm238_vm3 = vweird.f32 %v324_v42 }
 0x181   :  { %vm239_vm5 = vmor %vm237_vm4, %vm238_vm3 }
 0x182   :  { %v233_v44 = vmul.f32 %v324_v42, %v232_v43 }
 0x184   :  { %v234_v45 = vmul.f32 0.5, %v233_v44 }
 0x186   :  { %v235_v46 = vsub.f32 1.5, %v234_v45 }
 0x188   :  { %v236_v48 = vmul.f32 %v324_v42, %v235_v46 }
 0x18a   :  { %v240_v49 = vsel %vm239_vm5, %v324_v42, %v236_v48 }
 0x18b   :  { %v241_v50 = vmul.f32 %v240_v49, %v223_v47 }
 0x18d   :  { %v245_v52 = vperm.slane %v241_v50, 0  ;;  %v242_v53 = vmul.f32 %v241_v50, %v225_v32 }
 0x18f   :  { %v243_v54 = vsub.f32 %v224_v51, %v242_v53  ;;  %v247_v55 = vmul.f32 %v245_v52, %v207_v12 }
 0x191   :  { %v249_v56 = vperm.slane %v243_v54, 0 }
 0x193   :  { %v251_v57 = vadd.f32 %v249_v56, %v247_v55 }
 0x195   :  { %v252_v58 = vmax.f32 %v251_v57, 0.0 }
 0x197   :  { %289 = vmatmul.f32.vlgmr.msra.gmra.mxu2 %v252_v58 }
 0x21a   :  { %v290_v60 = vpop.f32.mrf.mxu2 }
 0x21b   :  { %v291_v61 = vadd.f32 %v320_v59, %v290_v60 }
 0x21d   :  { %293 = vst [vmem:[#allocation10] sm:$0xff] %v291_v61 }
 0x21e   :  { %304 = dma.vmem_to_hbm [thread:$0]  %s300_s14, 128, %s302_s17, [#allocation4]  }
 0x21f   :  { %451 = dma.done.wait [#allocation4], 128  }
 0x220   :  { %452 = vsyncadd [#allocation4], 4294967168 }
 0x221   :  { %309 = vsyncpa [#allocation3], 1 }
 0x222   :  { %310 = vsyncpa [#allocation6], 1 }
 0x223   :  { %311 = vsyncpa [#allocation9], 1 }
 0x224   :  { %312 = vsyncpa [#allocation4], 1 }

</bundles_post_ra>
